<compile_context>
chip_gen: v7x
topology: tpu7x:2x2x1
jax: 0.10.0
libtpu: 0.0.40
codegen_flags: <defaults>
</compile_context>

<pallas_src>
import functools

import jax
import jax.numpy as jnp
from jax.experimental import pallas as pl
from jax.experimental.pallas import tpu as pltpu


_LANE = 128  # output padded to a lane-dense width -> unmasked stores


def _generator_kernel(xdim,
                      x_ref,
                      w1_ref, b1_ref,
                      w2_ref, b2_ref,
                      w3_ref, b3_ref,
                      e_ref, r_ref,
                      out_ref):
    """One batch tile; all n_cats MLPs fused into 3 block-structured GEMMs."""
    x = x_ref[...]                                                    # (TB, xdim+n_cats)
    xf = x[:, :xdim]                                                  # (TB, xdim)
    xw = x[:, xdim:]                                                  # (TB, n_cats)

    # Linear(xdim, n_cats*hdim) + LeakyReLU(0.01)  (per-cat W1 concatenated on N)
    h = jnp.dot(xf, w1_ref[...], preferred_element_type=jnp.float32) + b1_ref[...]
    h = jnp.where(h > 0, h, 0.01 * h)

    # block-diagonal Linear(n_cats*hdim, n_cats*hdim) + LeakyReLU(0.01)
    h = jnp.dot(h, w2_ref[...], preferred_element_type=jnp.float32) + b2_ref[...]
    h = jnp.where(h > 0, h, 0.01 * h)

    # block-diagonal Linear(n_cats*hdim, n_cats*ydim) + Tanh
    y = jnp.tanh(jnp.dot(h, w3_ref[...], preferred_element_type=jnp.float32)
                 + b3_ref[...])                                       # (TB, n_cats*ydim)

    # weighted sum over categories:
    #   out[b, j] = sum_c xw[b, c] * y[b, c*ydim + j]
    # E expands xw to per-output-lane (E[c, c*ydim + j] = 1); R reduces over
    # categories and pads the output to _LANE lanes for a dense unmasked store.
    xw_lane = jnp.dot(xw, e_ref[...], preferred_element_type=jnp.float32)
    out_ref[...] = jnp.dot(y * xw_lane, r_ref[...],
                           preferred_element_type=jnp.float32)        # (TB, _LANE)


def _block_diag(mats):
    """mats: (n, r, c) -> block-diagonal (n*r, n*c)."""
    n, r, c = mats.shape
    out = jnp.zeros((n * r, n * c), mats.dtype)
    for i in range(n):
        out = out.at[i * r:(i + 1) * r, i * c:(i + 1) * c].set(mats[i])
    return out


def generator_forward(x, params, *, xdim, ydim, n_cats):
    """x: (B, xdim + n_cats) f32.  Returns (B, ydim) f32."""
    B = x.shape[0]
    w1, b1, w2, b2, w3, b3 = params
    hdim = w1.shape[-1]

    # ---- pack per-category weights into fused / block-diagonal matrices (JAX glue) ----
    w1p = jnp.transpose(w1, (1, 0, 2)).reshape(xdim, n_cats * hdim)   # (xdim, n_cats*hdim)
    b1p = b1.reshape(1, n_cats * hdim)
    w2p = _block_diag(w2)                                             # (n_cats*hdim, n_cats*hdim)
    b2p = b2.reshape(1, n_cats * hdim)
    w3p = _block_diag(w3)                                             # (n_cats*hdim, n_cats*ydim)
    b3p = b3.reshape(1, n_cats * ydim)

    # expansion matrix: E[c, c*ydim + j] = 1           (n_cats, n_cats*ydim)
    e = jnp.kron(jnp.eye(n_cats, dtype=jnp.float32),
                 jnp.ones((1, ydim), dtype=jnp.float32))
    # reduction + lane-padding matrix: R[c*ydim + j, j] = 1 (j < ydim)
    r = jnp.tile(jnp.eye(ydim, _LANE, dtype=jnp.float32), (n_cats, 1))

    # ---- batch tiling: categories are fused, only the batch is gridded ----
    xin = x
    if B <= 256:
        tile_b, b_pad = B, B                                          # one grid step
    else:
        tile_b = 256
        b_pad = ((B + tile_b - 1) // tile_b) * tile_b
        if b_pad != B:
            xin = jnp.pad(x, ((0, b_pad - B), (0, 0)))
    grid = (b_pad // tile_b,)

    def full_spec(shape):
        return pl.BlockSpec(shape, lambda i: (0, 0))                  # resident weight block

    in_specs = [
        pl.BlockSpec((tile_b, xdim + n_cats), lambda i: (i, 0)),      # raw input tile
        full_spec(w1p.shape), full_spec(b1p.shape),
        full_spec(w2p.shape), full_spec(b2p.shape),
        full_spec(w3p.shape), full_spec(b3p.shape),
        full_spec(e.shape), full_spec(r.shape),
    ]
    out_specs = pl.BlockSpec((tile_b, _LANE), lambda i: (i, 0))

    out = pl.pallas_call(
        functools.partial(_generator_kernel, xdim),
        out_shape=jax.ShapeDtypeStruct((b_pad, _LANE), jnp.float32),
        grid=grid,
        in_specs=in_specs,
        out_specs=out_specs,
        compiler_params=pltpu.CompilerParams(
            dimension_semantics=("parallel",)),
    )(xin, w1p, b1p, w2p, b2p, w3p, b3p, e, r)

    return out[:B, :ydim]


def init_params(key, *, xdim, hdim, ydim, n_cats):
    """Deterministic synthetic init (torch-Linear-like uniform(-1/sqrt(fan_in), ...))."""
    ks = jax.random.split(key, 6)

    def u(k, shape, fan_in):
        bound = 1.0 / jnp.sqrt(jnp.float32(fan_in))
        return jax.random.uniform(k, shape, jnp.float32, -bound, bound)

    w1 = u(ks[0], (n_cats, xdim, hdim), xdim)
    b1 = u(ks[1], (n_cats, hdim), xdim)
    w2 = u(ks[2], (n_cats, hdim, hdim), hdim)
    b2 = u(ks[3], (n_cats, hdim), hdim)
    w3 = u(ks[4], (n_cats, hdim, ydim), hdim)
    b3 = u(ks[5], (n_cats, ydim), hdim)
    return (w1, b1, w2, b2, w3, b3)


def reference_forward(x, params, *, xdim):
    """Pure-JAX reference for correctness checking."""
    w1, b1, w2, b2, w3, b3 = params
    xf = x[:, :xdim]
    xw = x[:, xdim:]
    leaky = lambda v: jnp.where(v > 0, v, 0.01 * v)
    outs = []
    for c in range(w1.shape[0]):
        h = leaky(xf @ w1[c] + b1[c])
        h = leaky(h @ w2[c] + b2[c])
        y = jnp.tanh(h @ w3[c] + b3[c])
        outs.append(y)
    outs = jnp.stack(outs, axis=1)                       # (B, n_cats, ydim)
    return (xw[:, :, None] * outs).sum(axis=1)           # (B, ydim)


if __name__ == "__main__":
    # Small shapes consistent with the module's forward:
    B, xdim, hdim, ydim, n_cats = 8, 6, 32, 5, 3

    key = jax.random.PRNGKey(0)
    k_x, k_p = jax.random.split(key)
    x = jax.random.normal(k_x, (B, xdim + n_cats), dtype=jnp.float32)
    params = init_params(k_p, xdim=xdim, hdim=hdim, ydim=ydim, n_cats=n_cats)

    fwd = jax.jit(functools.partial(generator_forward,
                                    xdim=xdim, ydim=ydim, n_cats=n_cats))
    out = fwd(x, params)
    out = jax.block_until_ready(out)

    ref = reference_forward(x, params, xdim=xdim)
    assert out.shape == (B, ydim)
    assert jnp.allclose(out, ref, atol=1e-5, rtol=1e-5), "mismatch vs reference"

    print("KERNEL_OK")
</pallas_src>

<mosaic_0001>
module attributes {stable_mosaic.version = 11 : i64} {
  func.func @_generator_kernel(%arg0: i32, %arg1: memref<8x9xf32, #tpu.memory_space<vmem>>, %arg2: memref<6x96xf32, #tpu.memory_space<vmem>>, %arg3: memref<1x96xf32, #tpu.memory_space<vmem>>, %arg4: memref<96x96xf32, #tpu.memory_space<vmem>>, %arg5: memref<1x96xf32, #tpu.memory_space<vmem>>, %arg6: memref<96x15xf32, #tpu.memory_space<vmem>>, %arg7: memref<1x15xf32, #tpu.memory_space<vmem>>, %arg8: memref<3x15xf32, #tpu.memory_space<vmem>>, %arg9: memref<15x128xf32, #tpu.memory_space<vmem>>, %arg10: memref<8x128xf32, #tpu.memory_space<vmem>>) attributes {dimension_semantics = [#tpu.dimension_semantics<parallel>], iteration_bounds = array<i64: 1>, scalar_prefetch = 0 : i64, scratch_operands = 0 : i64, tpu.core_type = #tpu.core_type<tc>, window_params = [{transform_indices = @transform_0, window_bounds = array<i64: 8, 9>}, {pipeline_mode = #tpu.pipeline_mode<synchronous>, transform_indices = @transform_1, window_bounds = array<i64: 6, 96>}, {pipeline_mode = #tpu.pipeline_mode<synchronous>, transform_indices = @transform_2, window_bounds = array<i64: 1, 96>}, {pipeline_mode = #tpu.pipeline_mode<synchronous>, transform_indices = @transform_3, window_bounds = array<i64: 96, 96>}, {pipeline_mode = #tpu.pipeline_mode<synchronous>, transform_indices = @transform_4, window_bounds = array<i64: 1, 96>}, {pipeline_mode = #tpu.pipeline_mode<synchronous>, transform_indices = @transform_5, window_bounds = array<i64: 96, 15>}, {pipeline_mode = #tpu.pipeline_mode<synchronous>, transform_indices = @transform_6, window_bounds = array<i64: 1, 15>}, {pipeline_mode = #tpu.pipeline_mode<synchronous>, transform_indices = @transform_7, window_bounds = array<i64: 3, 15>}, {pipeline_mode = #tpu.pipeline_mode<synchronous>, transform_indices = @transform_8, window_bounds = array<i64: 15, 128>}, {transform_indices = @transform_9, window_bounds = array<i64: 8, 128>}]} {
    %c0 = arith.constant 0 : index
    %c0_0 = arith.constant 0 : index
    %0 = vector.load %arg1[%c0, %c0_0] : memref<8x9xf32, #tpu.memory_space<vmem>>, vector<8x9xf32>
    %1 = vector.extract_strided_slice %0 {offsets = [0, 0], sizes = [8, 6], strides = [1, 1]} : vector<8x9xf32> to vector<8x6xf32>
    %2 = vector.extract_strided_slice %0 {offsets = [0, 6], sizes = [8, 3], strides = [1, 1]} : vector<8x9xf32> to vector<8x3xf32>
    %c0_1 = arith.constant 0 : index
    %c0_2 = arith.constant 0 : index
    %3 = vector.load %arg2[%c0_1, %c0_2] : memref<6x96xf32, #tpu.memory_space<vmem>>, vector<6x96xf32>
    %cst = arith.constant dense<0.000000e+00> : vector<8x96xf32>
    %4 = tpu.matmul %1, %3, %cst {dimension_numbers = #tpu.dot_dimension_numbers<[1], [0], [0], [1], [0, 0, 1, 1], [], []>} : vector<8x6xf32>, vector<6x96xf32>, vector<8x96xf32> -> vector<8x96xf32>
    %c0_3 = arith.constant 0 : index
    %c0_4 = arith.constant 0 : index
    %5 = vector.load %arg3[%c0_3, %c0_4] : memref<1x96xf32, #tpu.memory_space<vmem>>, vector<1x96xf32>
    %6 = vector.broadcast %5 : vector<1x96xf32> to vector<8x96xf32>
    %7 = arith.addf %4, %6 : vector<8x96xf32>
    %cst_5 = arith.constant 0.000000e+00 : f32
    %8 = vector.broadcast %cst_5 : f32 to vector<8x96xf32>
    %9 = arith.cmpf ogt, %7, %8 : vector<8x96xf32>
    %cst_6 = arith.constant 0.00999999977 : f32
    %10 = vector.broadcast %cst_6 : f32 to vector<8x96xf32>
    %11 = arith.mulf %10, %7 : vector<8x96xf32>
    %12 = arith.select %9, %7, %11 : vector<8x96xi1>, vector<8x96xf32>
    %c0_7 = arith.constant 0 : index
    %c0_8 = arith.constant 0 : index
    %13 = vector.load %arg4[%c0_7, %c0_8] : memref<96x96xf32, #tpu.memory_space<vmem>>, vector<96x96xf32>
    %cst_9 = arith.constant dense<0.000000e+00> : vector<8x96xf32>
    %14 = tpu.matmul %12, %13, %cst_9 {dimension_numbers = #tpu.dot_dimension_numbers<[1], [0], [0], [1], [0, 0, 1, 1], [], []>} : vector<8x96xf32>, vector<96x96xf32>, vector<8x96xf32> -> vector<8x96xf32>
    %c0_10 = arith.constant 0 : index
    %c0_11 = arith.constant 0 : index
    %15 = vector.load %arg5[%c0_10, %c0_11] : memref<1x96xf32, #tpu.memory_space<vmem>>, vector<1x96xf32>
    %16 = vector.broadcast %15 : vector<1x96xf32> to vector<8x96xf32>
    %17 = arith.addf %14, %16 : vector<8x96xf32>
    %cst_12 = arith.constant 0.000000e+00 : f32
    %18 = vector.broadcast %cst_12 : f32 to vector<8x96xf32>
    %19 = arith.cmpf ogt, %17, %18 : vector<8x96xf32>
    %cst_13 = arith.constant 0.00999999977 : f32
    %20 = vector.broadcast %cst_13 : f32 to vector<8x96xf32>
    %21 = arith.mulf %20, %17 : vector<8x96xf32>
    %22 = arith.select %19, %17, %21 : vector<8x96xi1>, vector<8x96xf32>
    %c0_14 = arith.constant 0 : index
    %c0_15 = arith.constant 0 : index
    %23 = vector.load %arg6[%c0_14, %c0_15] : memref<96x15xf32, #tpu.memory_space<vmem>>, vector<96x15xf32>
    %cst_16 = arith.constant dense<0.000000e+00> : vector<8x15xf32>
    %24 = tpu.matmul %22, %23, %cst_16 {dimension_numbers = #tpu.dot_dimension_numbers<[1], [0], [0], [1], [0, 0, 1, 1], [], []>} : vector<8x96xf32>, vector<96x15xf32>, vector<8x15xf32> -> vector<8x15xf32>
    %c0_17 = arith.constant 0 : index
    %c0_18 = arith.constant 0 : index
    %25 = vector.load %arg7[%c0_17, %c0_18] : memref<1x15xf32, #tpu.memory_space<vmem>>, vector<1x15xf32>
    %26 = vector.broadcast %25 : vector<1x15xf32> to vector<8x15xf32>
    %27 = arith.addf %24, %26 : vector<8x15xf32>
    %28 = math.tanh %27 : vector<8x15xf32>
    %c0_19 = arith.constant 0 : index
    %c0_20 = arith.constant 0 : index
    %29 = vector.load %arg8[%c0_19, %c0_20] : memref<3x15xf32, #tpu.memory_space<vmem>>, vector<3x15xf32>
    %cst_21 = arith.constant dense<0.000000e+00> : vector<8x15xf32>
    %30 = tpu.matmul %2, %29, %cst_21 {dimension_numbers = #tpu.dot_dimension_numbers<[1], [0], [0], [1], [0, 0, 1, 1], [], []>} : vector<8x3xf32>, vector<3x15xf32>, vector<8x15xf32> -> vector<8x15xf32>
    %31 = arith.mulf %28, %30 : vector<8x15xf32>
    %c0_22 = arith.constant 0 : index
    %c0_23 = arith.constant 0 : index
    %32 = vector.load %arg9[%c0_22, %c0_23] : memref<15x128xf32, #tpu.memory_space<vmem>>, vector<15x128xf32>
    %cst_24 = arith.constant dense<0.000000e+00> : vector<8x128xf32>
    %33 = tpu.matmul %31, %32, %cst_24 {dimension_numbers = #tpu.dot_dimension_numbers<[1], [0], [0], [1], [0, 0, 1, 1], [], []>} : vector<8x15xf32>, vector<15x128xf32>, vector<8x128xf32> -> vector<8x128xf32>
    %c0_25 = arith.constant 0 : index
    %c0_26 = arith.constant 0 : index
    %34 = vector.load %arg10[%c0_25, %c0_26] : memref<8x128xf32, #tpu.memory_space<vmem>>, vector<8x128xf32>
    tpu.vector_store %arg10[%c0_25, %c0_26], %33 {strides = array<i32>} : memref<8x128xf32, #tpu.memory_space<vmem>>, vector<8x128xf32>,
    return
  }
  func.func @transform_0(%arg0: i32) -> (i32, i32) {
    %c0_i32 = arith.constant 0 : i32
    %c0_i32_0 = arith.constant 0 : i32
    return %arg0, %c0_i32 : i32, i32
  }
  func.func @transform_1(%arg0: i32) -> (i32, i32) {
    %c0_i32 = arith.constant 0 : i32
    %c0_i32_0 = arith.constant 0 : i32
    %c0_i32_1 = arith.constant 0 : i32
    return %c0_i32, %c0_i32_0 : i32, i32
  }
  func.func @transform_2(%arg0: i32) -> (i32, i32) {
    %c0_i32 = arith.constant 0 : i32
    %c0_i32_0 = arith.constant 0 : i32
    %c0_i32_1 = arith.constant 0 : i32
    return %c0_i32, %c0_i32_0 : i32, i32
  }
  func.func @transform_3(%arg0: i32) -> (i32, i32) {
    %c0_i32 = arith.constant 0 : i32
    %c0_i32_0 = arith.constant 0 : i32
    %c0_i32_1 = arith.constant 0 : i32
    return %c0_i32, %c0_i32_0 : i32, i32
  }
  func.func @transform_4(%arg0: i32) -> (i32, i32) {
    %c0_i32 = arith.constant 0 : i32
    %c0_i32_0 = arith.constant 0 : i32
    %c0_i32_1 = arith.constant 0 : i32
    return %c0_i32, %c0_i32_0 : i32, i32
  }
  func.func @transform_5(%arg0: i32) -> (i32, i32) {
    %c0_i32 = arith.constant 0 : i32
    %c0_i32_0 = arith.constant 0 : i32
    %c0_i32_1 = arith.constant 0 : i32
    return %c0_i32, %c0_i32_0 : i32, i32
  }
  func.func @transform_6(%arg0: i32) -> (i32, i32) {
    %c0_i32 = arith.constant 0 : i32
    %c0_i32_0 = arith.constant 0 : i32
    %c0_i32_1 = arith.constant 0 : i32
    return %c0_i32, %c0_i32_0 : i32, i32
  }
  func.func @transform_7(%arg0: i32) -> (i32, i32) {
    %c0_i32 = arith.constant 0 : i32
    %c0_i32_0 = arith.constant 0 : i32
    %c0_i32_1 = arith.constant 0 : i32
    return %c0_i32, %c0_i32_0 : i32, i32
  }
  func.func @transform_8(%arg0: i32) -> (i32, i32) {
    %c0_i32 = arith.constant 0 : i32
    %c0_i32_0 = arith.constant 0 : i32
    %c0_i32_1 = arith.constant 0 : i32
    return %c0_i32, %c0_i32_0 : i32, i32
  }
  func.func @transform_9(%arg0: i32) -> (i32, i32) {
    %c0_i32 = arith.constant 0 : i32
    %c0_i32_0 = arith.constant 0 : i32
    return %arg0, %c0_i32 : i32, i32
  }
}

</mosaic_0001>

<bundles_post_ra>
// kernel: tile.9
= control target key start
LH: loop header
LB: loop body
LE: loop exit
PB: predicated region body
PF: predicated region fallthrough
CT: control target
= control target key end

     0   :  { %s44_s0 = inlined_call_operand.vmem [shape: f32[3,5,128], index: 0, kind: input, shape index: {}]   ;;  %s45_s1 = inlined_call_operand.vmem [shape: f32[15,128], index: 1, kind: output, shape index: {}]  }
   0x1   :  { %v2_v0 = vld [vmem:[%s44_s0] sm:$0x1f]   ;;  %v12_v1 = vld [vmem:[%s44_s0 + $0x8] sm:$0x1f]   ;;  %v14_v2 = vld [vmem:[%s44_s0 + $0x10] sm:$0x1f]  }
   0x2   :  { %3 = vst [vmem:[%s45_s1] sm:$0x1f] %v2_v0   ;;  %13 = vst [vmem:[%s45_s1 + $0x5] sm:$0x1f] %v12_v1  }
   0x3   :  { %15 = vst [vmem:[%s45_s1 + $0xa] sm:$0x1f] %v14_v2  }

// kernel: generator_forward.1
= control target key start
LH: loop header
LB: loop body
LE: loop exit
PB: predicated region body
PF: predicated region fallthrough
CT: control target
= control target key end

     0   :  { %vm46_vm0 = vcmask 1045504   ;;  %v675_v2 = vmov 0.0   ;;  %vm676_vm1 = vmmov 0   ;;  %vm42_vm2 = vcmask 48128   ;;  %s866_s0 = inlined_call_operand.vmem [shape: f32[8,9], index: 0, kind: input, shape index: {}]   ;;  %s867_s1 = inlined_call_operand.vmem [shape: f32[6,96], index: 1, kind: input, shape index: {}]   ;;  %s868_s2 = inlined_call_operand.vmem [shape: f32[1,96], index: 2, kind: input, shape index: {}]   ;;  %s869_s3 = inlined_call_operand.vmem [shape: f32[96,96], index: 3, kind: input, shape index: {}]   ;;  %s870_s4 = inlined_call_operand.vmem [shape: f32[1,96], index: 4, kind: input, shape index: {}]   ;;  %s871_s5 = inlined_call_operand.vmem [shape: f32[96,15], index: 5, kind: input, shape index: {}]   ;;  %s872_s6 = inlined_call_operand.vmem [shape: f32[1,15], index: 6, kind: input, shape index: {}]   ;;  %s873_s7 = inlined_call_operand.vmem [shape: f32[3,15], index: 7, kind: input, shape index: {}]   ;;  %s874_s8 = inlined_call_operand.vmem [shape: f32[15,128], index: 8, kind: input, shape index: {}]   ;;  %s875_s9 = inlined_call_operand.hbm [shape: f32[8,128], index: 9, kind: output, shape index: {}]  }
   0x1   :  { %v34_v0 = vld [vmem:[%s867_s1] sm:$0x3f]  ;;  %532 = vmatprep.subr.mxu0 %v675_v2  ;;  %534 = vmatprep.mubr.msk.f32.mxu0 %vm676_vm1, %v675_v2  ;;  %v124_v4 = vld [vmem:[%s869_s3 + $0x8] sm:$0xff]  ;;  %v125_v5 = vld [vmem:[%s869_s3 + $0x10] sm:$0xff]  ;;  %v677_v6 = vmov 0.0|0.0  }
   0x2   :  { %v33_v1 = vld [vmem:[%s866_s0] sm:$0xff]  ;;  %533 = vmatpush3.msk.msra.mxu0 %vm46_vm0, %v34_v0  ;;  %603 = vmatprep.subr.bf16.mxu1 %v677_v6  ;;  %v126_v8 = vld [vmem:[%s869_s3 + $0x18] sm:$0xff] }
   0x3   :  { %v123_v3 = vld [vmem:[%s869_s3] sm:$0xff]  ;;  %535 = vmatmul.mubr.msk.f32.vlgmr.msra.gmra.mrb[0].mxu0 %vm42_vm2, %v33_v1  ;;  %561 = vmatprep.mubr.msk.f32.mxu1 %vm676_vm1, %v675_v2  ;;  %v607_v9 = vpack.c.bf16 %v126_v8, %v125_v5 }
   0x4   :  { %v604_v7 = vpack.c.bf16 %v124_v4, %v123_v3  ;;  %621 = vmatprep.subr.bf16.mxu0 %v677_v6 }
   0x6   :  { %605 = vmatpush3.bf16.msra.mxu1 %v604_v7 }
   0x7   :  { %14 = vsyncpa [#allocation3], 0  ;;  %606 = vmatprep.subr.bf16.mxu1 %v677_v6  ;;  %v127_v10 = vld [vmem:[%s869_s3 + $0x20] sm:$0xff]  ;;  %v128_v11 = vld [vmem:[%s869_s3 + $0x28] sm:$0xff]  ;;  %588 = vmatprep.mubr.msk.f32.mxu0 %vm676_vm1, %v675_v2  ;;  %s678_s18 = smov 122   ;;  %vm142_vm4 = vcmask 785408  }
   0x8   :  { %v610_v12 = vpack.c.bf16 %v128_v11, %v127_v10  ;;  %v129_v13 = vld [vmem:[%s869_s3 + $0x30] sm:$0xff]  ;;  %v130_v14 = vld [vmem:[%s869_s3 + $0x38] sm:$0xff]  ;;  %v131_v16 = vld [vmem:[%s869_s3 + $0x40] sm:$0xff]  ;;  %313 = vrot.lane.b32.xlu0 %v33_v1, %s678_s18  ;;  %vm318_vm5 = vcmask 1042432   ;;  %vm315_vm6 = vcmask 23552   ;;  %vm399_vm8 = vcmask 1046528  }
   0x9   :  { %v613_v15 = vpack.c.bf16 %v130_v14, %v129_v13  ;;  %v132_v17 = vld [vmem:[%s869_s3 + $0x48] sm:$0xff]  ;;  %v133_v19 = vld [vmem:[%s869_s3 + $0x50] sm:$0xff]  ;;  %v134_v20 = vld [vmem:[%s869_s3 + $0x58] sm:$0xff]  ;;  %vm679_vm9 = vmmov 1   ;;  %vm395_vm11 = vcmask 121856   ;;  %s680_s20 = smov [#allocation2]  }
   0xa   :  { %608 = vmatpush3.bf16.msra.mxu1 %v607_v9  ;;  %v616_v18 = vpack.c.bf16 %v132_v17, %v131_v16  ;;  %v619_v21 = vpack.c.bf16 %v134_v20, %v133_v19  ;;  %v219_v22 = vld [vmem:[%s871_s5] sm:$0xff]  ;;  %v220_v23 = vld [vmem:[%s871_s5 + $0x8] sm:$0xff]  ;;  %v221_v24 = vld [vmem:[%s871_s5 + $0x10] sm:$0xff]  ;;  %s480_s21 = sshll.u32 %s680_s20, 4  ;;  %s481_s21 = int_to_ptr.vmem [resolvable:$true] %s480_s21 }
   0xb   :  { %609 = vmatprep.subr.bf16.mxu1 %v677_v6  ;;  %v622_v25 = vpack.c.bf16 %v220_v23, %v219_v22  ;;  %v222_v26 = vld [vmem:[%s871_s5 + $0x18] sm:$0xff]  ;;  %v223_v28 = vld [vmem:[%s871_s5 + $0x20] sm:$0xff]  ;;  %v224_v29 = vld [vmem:[%s871_s5 + $0x28] sm:$0xff]  ;;  %p656_p1 = scmp.lt.s32.totalorder %s481_s21, %s481_s21 }
   0xc   :  { %v625_v27 = vpack.c.bf16 %v222_v26, %v221_v24  ;;  %v628_v30 = vpack.c.bf16 %v224_v29, %v223_v28  ;;  %v225_v31 = vld [vmem:[%s871_s5 + $0x30] sm:$0xff]  ;;  %v226_v32 = vld [vmem:[%s871_s5 + $0x38] sm:$0xff]  ;;  %v227_v34 = vld [vmem:[%s871_s5 + $0x40] sm:$0xff] }
   0xd   :  { %623 = vmatpush3.bf16.msra.mxu0 %v622_v25  ;;  %v631_v33 = vpack.c.bf16 %v226_v32, %v225_v31  ;;  %v228_v35 = vld [vmem:[%s871_s5 + $0x48] sm:$0xff]  ;;  %v488_v37 = vld [vmem:[%s868_s2] ss:$0 sm:$0xff]  ;;  %v229_v43 = vld [vmem:[%s871_s5 + $0x50] sm:$0xff] }
   0xe   :  { %611 = vmatpush3.bf16.msra.mxu1 %v610_v12  ;;  %624 = vmatprep.subr.bf16.mxu0 %v677_v6  ;;  %v634_v36 = vpack.c.bf16 %v228_v35, %v227_v34  ;;  %v230_v44 = vld [vmem:[%s871_s5 + $0x58] sm:$0xff]  ;;  %v312_v46 = vld [vmem:[%s873_s7] sm:$0x7]  ;;  %v394_v57 = vld [vmem:[%s874_s8 + $0x8] sm:$0x7f] }
   0xf   :  { %612 = vmatprep.subr.bf16.mxu1 %v677_v6  ;;  %v637_v45 = vpack.c.bf16 %v230_v44, %v229_v43  ;;  %v491_v48 = vld [vmem:[%s870_s4] ss:$0 sm:$0xff]  ;;  %vm641_vm10 = vmpackc.low %vm399_vm8, %vm679_vm9 }
  0x10   :  { %v393_v56 = vld [vmem:[%s874_s8] sm:$0xff]  ;;  %s651_s8 = scalar_lea.vmem %s481_s21, 128 }
  0x11   :  { %626 = vmatpush3.bf16.msra.mxu0 %v625_v27  ;;  %v640_v58 = vpack.c.bf16 %v394_v57, %v393_v56  ;;  %v493_v59 = vld [vmem:[%s872_s6] ss:$0 sm:$0xff]  ;;  %p652_p0 = scmp.ne.s32.totalorder %s481_s21, %s651_s8  ;;  %p657_p2 = scmp.lt.s32.totalorder %s651_s8, %s651_s8 }
  0x12   :  { %614 = vmatpush3.bf16.msra.mxu1 %v613_v15  ;;  %627 = vmatprep.subr.bf16.mxu0 %v677_v6 }
  0x13   :  { %615 = vmatprep.subr.bf16.mxu1 %v677_v6  ;;  %p658_p3 = por %p657_p2, %p656_p1 }
  0x15   :  { %629 = vmatpush3.bf16.msra.mxu0 %v628_v30  ;;  %p659_p4 = pnand %p658_p3, %p652_p0 }
  0x16   :  { %617 = vmatpush3.bf16.msra.mxu1 %v616_v18  ;;  %630 = vmatprep.subr.bf16.mxu0 %v677_v6 }
  0x17   :  { %618 = vmatprep.subr.bf16.mxu1 %v677_v6 }
  0x19   :  { %632 = vmatpush3.bf16.msra.mxu0 %v631_v33 }
  0x1a   :  { %620 = vmatpush3.bf16.msra.mxu1 %v619_v21  ;;  %633 = vmatprep.subr.bf16.mxu0 %v677_v6 }
  0x1b   :  { %591 = vmatprep.subr.mxu1 %v675_v2 }
  0x1d   :  { %635 = vmatpush3.bf16.msra.mxu0 %v634_v36 }
  0x1e   :  { %636 = vmatprep.subr.bf16.mxu0 %v677_v6 }
  0x21   :  { %638 = vmatpush3.bf16.msra.mxu0 %v637_v45 }
  0x22   :  { %639 = vmatprep.subr.bf16.mxu0 %v677_v6 }
  0x7a   :  { %v314_v47 = vpop.permute.xlu0 %313 }
  0xd6   :  { %v116_v38 = vpop.f32.mrb[0].mxu0 }
  0xd7   :  { %v117_v39 = vadd.f32 %v488_v37, %v116_v38  ;;  %v536_v40 = vpop.f32.mrb[1].mxu0 }
  0xd9   :  { %vm120_vm3 = vcmp.gt.f32.partialorder %v117_v39, 0.0  ;;  %v121_v41 = vmul.f32 0.01, %v117_v39 }
  0xdb   :  { %v122_v42 = vsel %vm120_vm3, %v117_v39, %v121_v41 }
  0xdc   :  { %562 = vmatmul.mubr.msk.f32.vlgmr.msra.gmra.mrb[0].mxu1 %vm142_vm4, %v122_v42 }
  0xdd   :  { %593 = vmatprep.mubr.msk.f32.mxu1 %vm676_vm1, %v675_v2  ;;  %592 = vmatpush3.msk.msra.mxu1 %vm318_vm5, %v312_v46 }
  0xe0   :  { %594 = vmatmul.mubr.msk.f32.vlgmr.msra.gmra.mrb[2].mxu1 %vm315_vm6, %v314_v47 }
 0x1af   :  { %v212_v49 = vpop.f32.mrb[0].mxu1 }
 0x1b0   :  { %v213_v50 = vadd.f32 %v491_v48, %v212_v49  ;;  %v563_v51 = vpop.f32.mrb[1].mxu1 }
 0x1b2   :  { %vm216_vm7 = vcmp.gt.f32.partialorder %v213_v50, 0.0  ;;  %v217_v52 = vmul.f32 0.01, %v213_v50 }
 0x1b3   :  { %v388_v54 = vpop.f32.mrb[2].mxu1 }
 0x1b4   :  { %v218_v53 = vsel %vm216_vm7, %v213_v50, %v217_v52  ;;  %v595_v55 = vpop.f32.mrb[3].mxu1 }
 0x1b5   :  { %589 = vmatmul.mubr.msk.f32.vlgmr.msra.gmra.mrb[2].mxu0 %vm142_vm4, %v218_v53 }
 0x1b6   :  { %600 = vmatprep.mubr.msk.f32.mxu0 %vm676_vm1, %v675_v2  ;;  %642 = vmatpush3.bf16.msk.msra.mxu0 %vm641_vm10, %v640_v58 }
 0x288   :  { %v307_v60 = vpop.f32.mrb[2].mxu0 }
 0x289   :  { %v308_v61 = vadd.f32 %v493_v59, %v307_v60  ;;  %v590_v62 = vpop.f32.mrb[3].mxu0 }
 0x28b   :  { %649 = vtanh.f32 %v308_v61 }
 0x295   :  { %v650_v63 = vpop.eup %649 }
 0x296   :  { %v392_v0 = vmul.f32 %v650_v63, %v388_v54 }
 0x298   :  { %601 = vmatmul.mubr.msk.f32.vlgmr.msra.gmra.mrb[4].mxu0 %vm395_vm11, %v392_v0 }
 0x36b   :  { %v469_v1 = vpop.f32.mrb[4].mxu0 }
 0x36c   :  { %473 = vst [vmem:[#allocation2] sm:$0xff] %v469_v1  ;;  %v602_v2 = vpop.f32.mrb[5].mxu0 }
 0x36d   :  { %662 = shalt.err (!%p659_p4)
}
 0x36e   :  { %s663_s23 = scalar_lea.hbm %s875_s9, 128 }
 0x36f   :  { %p664_p5 = scmp.ne.s32.totalorder %s875_s9, %s663_s23  ;;  %p667_p6 = scmp.lt.u32.totalorder %s663_s23, %s875_s9 }
 0x371   :  { %p669_p7 = pnand %p667_p6, %p664_p5 }
 0x373   :  { %672 = shalt.err (!%p669_p7)
}
 0x374   :  { %483 = dma.vmem_to_hbm [thread:$0]  %s481_s21, 128, %s875_s9, [#allocation3]  }
 0x375   :  { %673 = dma.done.wait [#allocation3], 128  }
 0x376   :  { %674 = vsyncadd [#allocation3], 4294967168 }
 0x377   :  { %487 = vsyncpa [#allocation3], 1 }

</bundles_post_ra>
